<compile_context>
chip_gen: v5e
topology: v5e:2x2
jax: 0.10.0
libtpu: 0.0.40
codegen_flags: <defaults>
</compile_context>

<pallas_src>
import functools

import jax
import jax.numpy as jnp
from jax.experimental import pallas as pl
from jax.experimental.pallas import tpu as pltpu


# ----------------------------- configuration ------------------------------
FEATURE_DIMS = {"user": 16, "item": 16, "category": 16, "context": 16}
EMBEDDING_SIZE = 32
HIDDEN_DIMS = (64, 32)                    # two deep layers, fixed statically
TOTAL_DIM = sum(FEATURE_DIMS.values())    # 64
NUM_FIELDS = len(FEATURE_DIMS)            # 4
DEEP_IN = EMBEDDING_SIZE * NUM_FIELDS     # 128

_FIELD_SLICES = []
_off = 0
for _name, _d in FEATURE_DIMS.items():
    _FIELD_SLICES.append((_off, _d))
    _off += _d

# Row layout of the fused, transposed stage-1 LHS:  [V_bd^T | Emb_bd^T | v^T | lin_w^T | 0]
_ROW_FE0 = 0
_ROW_DEEP0 = DEEP_IN                        # 128
_ROW_SE0 = 2 * DEEP_IN                      # 256
_ROW_LIN = 2 * DEEP_IN + EMBEDDING_SIZE     # 288
_N1 = _ROW_LIN + 1                          # 289
_N1_PAD = ((_N1 + 7) // 8) * 8              # 296 (sublane-aligned)

# Same dimension numbers flash-attention uses for q @ k^T (contract last dims).
_TRANS_B_DIMS = (((1,), (1,)), ((), ()))


def _round_up(n, m):
    return ((n + m - 1) // m) * m


# ------------------------------- the kernel -------------------------------
def _deepfm_kernel(scalars_ref,            # SMEM (3,): [lin_b, b_out, w_out[0]]
                   x_ref,                  # VMEM (T, D) batch tile (natural layout)
                   wft_ref,                # VMEM (N1_PAD, D) fused stage-1 weights^T
                   w1t_ref, b1_ref,        # VMEM (H1, DEEP_IN), (H1, 1)
                   w2t_ref, b2_ref,        # VMEM (H2, H1),      (H2, 1)
                   wo_ref,                 # VMEM (H2, 1)  == w_out[1:]
                   out_ref):               # VMEM (1, T)   lane-dense probabilities
    x = x_ref[...]                                                    # (T, D) f32

    # ---- one wide MXU matmul, directly producing the transposed result ----
    #   bigT = wfT @ x^T   (trans-B dot_general; no explicit transpose anywhere)
    big_t = jax.lax.dot_general(
        wft_ref[...], x, dimension_numbers=_TRANS_B_DIMS,
        preferred_element_type=jnp.float32)                          # (N1_PAD, T)

    fe_t = big_t[_ROW_FE0:_ROW_DEEP0, :]      # per-field FM embeddings (F*E, T)
    deep_t = big_t[_ROW_DEEP0:_ROW_SE0, :]    # deep-tower input         (F*E, T)
    sum_t = big_t[_ROW_SE0:_ROW_LIN, :]       # x @ v  (sum over fields)  (E, T)
    lin_row = big_t[_ROW_LIN:_ROW_LIN + 1, :]  # FM linear term, no bias  (1, T)

    lin_b = scalars_ref[0]
    b_out = scalars_ref[1]
    w_out0 = scalars_ref[2]

    # ---- FM pairwise interaction: 0.5 * (||sum_f e_f||^2 - sum_f ||e_f||^2) ----
    # Sublane (axis-0) reductions -> (1, T) rows, no columns anywhere.
    interaction = 0.5 * (jnp.sum(sum_t * sum_t, axis=0, keepdims=True)
                         - jnp.sum(fe_t * fe_t, axis=0, keepdims=True))   # (1, T)
    fm_row = lin_row + lin_b + interaction                                # (1, T)

    # ---- deep MLP in transposed form (ReLU; dropout = identity in eval) ----
    h = jnp.dot(w1t_ref[...], deep_t,
                preferred_element_type=jnp.float32) + b1_ref[...]         # (H1, T)
    h = jnp.maximum(h, 0.0)
    h = jnp.dot(w2t_ref[...], h,
                preferred_element_type=jnp.float32) + b2_ref[...]         # (H2, T)
    h = jnp.maximum(h, 0.0)

    # ---- final projection: w_out0*fm + w_out[1:].h + b_out, all on rows ----
    deep_row = jnp.sum(h * wo_ref[...], axis=0, keepdims=True)            # (1, T)
    logits = w_out0 * fm_row + deep_row + b_out                           # (1, T)
    out_ref[...] = jax.nn.sigmoid(logits)                                 # lane-dense store


# ------------------------- fused-weight construction ------------------------
def _build_fused_weights_t(params):
    """Builds the (N1_PAD, D) fused, transposed stage-1 LHS."""
    D, E = TOTAL_DIM, EMBEDDING_SIZE
    v = params["v"].astype(jnp.float32)
    emb_w = params["emb_w"].astype(jnp.float32)
    v_bd = jnp.zeros((D, DEEP_IN), jnp.float32)
    emb_bd = jnp.zeros((D, DEEP_IN), jnp.float32)
    for f, (s, d) in enumerate(_FIELD_SLICES):
        v_bd = v_bd.at[s:s + d, f * E:(f + 1) * E].set(v[s:s + d, :])
        emb_bd = emb_bd.at[s:s + d, f * E:(f + 1) * E].set(emb_w[s:s + d, :])
    w_fused = jnp.concatenate(
        [v_bd, emb_bd, v, params["lin_w"].astype(jnp.float32)], axis=1)   # (D, 289)
    w_fused = jnp.pad(w_fused, ((0, 0), (0, _N1_PAD - _N1)))              # (D, 296)
    return w_fused.T                                                      # (296, D)


def _pick_tile(batch, block_b):
    """Batch tile: multiple of 128 (unmasked output stores), >=2 tiles when the
    batch is big enough (v7x: 2 TensorCores on the 'parallel' axis)."""
    b8 = _round_up(batch, 8)
    if b8 > block_b:
        tile_b = block_b
    elif b8 >= 256:
        tile_b = _round_up((b8 + 1) // 2, 128)
    else:
        tile_b = b8                      # single tile; block == full array
    b_pad = _round_up(b8, tile_b)
    return tile_b, b_pad


# ------------------------------- wrapper -----------------------------------
@functools.partial(jax.jit, static_argnames=("block_b",))
def deepfm_forward(x, params, block_b=1024):
    """Dense-feature DeepFM forward. params: dict from init_params.

    block_b: target batch tile (sweep 512-2048; multiples of 128)."""
    x = x.astype(jnp.float32)
    B, D = x.shape
    if D != TOTAL_DIM:
        raise ValueError(f"expected feature dim {TOTAL_DIM}, got {D}")

    block_b = max(128, _round_up(block_b, 128))
    tile_b, b_pad = _pick_tile(B, block_b)
    if b_pad != B:
        x = jnp.pad(x, ((0, b_pad - B), (0, 0)))
    num_tiles = b_pad // tile_b

    h1, h2 = HIDDEN_DIMS
    wft = _build_fused_weights_t(params)                                # (296, 64)
    w1t = params["w1"].astype(jnp.float32).T                            # (H1, 128)
    b1c = params["b1"].astype(jnp.float32).T                            # (H1, 1)
    w2t = params["w2"].astype(jnp.float32).T                            # (H2, H1)
    b2c = params["b2"].astype(jnp.float32).T                            # (H2, 1)
    wo_col = params["w_out"][1:, :].astype(jnp.float32)                 # (H2, 1)
    scalars = jnp.stack([params["lin_b"][0, 0],
                         params["b_out"][0, 0],
                         params["w_out"][0, 0]]).astype(jnp.float32)    # (3,)

    flops = (2 * b_pad * (_N1_PAD * TOTAL_DIM + h1 * DEEP_IN + h2 * h1 + h2)
             + 8 * b_pad * _N1_PAD)
    bytes_accessed = 4 * (b_pad * TOTAL_DIM + _N1_PAD * TOTAL_DIM
                          + h1 * DEEP_IN + h1 + h2 * h1 + h2 + h2 + b_pad + 3)

    out = pl.pallas_call(
        _deepfm_kernel,
        out_shape=jax.ShapeDtypeStruct((1, b_pad), jnp.float32),
        grid=(num_tiles,),
        in_specs=[
            pl.BlockSpec(memory_space=pltpu.MemorySpace.SMEM),           # scalars
            pl.BlockSpec((tile_b, TOTAL_DIM), lambda i: (i, 0)),         # x tile
            pl.BlockSpec((_N1_PAD, TOTAL_DIM), lambda i: (0, 0)),        # fused W^T (resident)
            pl.BlockSpec((h1, DEEP_IN), lambda i: (0, 0)),               # w1^T
            pl.BlockSpec((h1, 1), lambda i: (0, 0)),                     # b1 column
            pl.BlockSpec((h2, h1), lambda i: (0, 0)),                    # w2^T
            pl.BlockSpec((h2, 1), lambda i: (0, 0)),                     # b2 column
            pl.BlockSpec((h2, 1), lambda i: (0, 0)),                     # w_out[1:]
        ],
        out_specs=pl.BlockSpec((1, tile_b), lambda i: (0, i)),           # lane-dense row
        compiler_params=pltpu.CompilerParams(
            dimension_semantics=("parallel",),       # batch tiles independent (2 TCs on v7x)
            vmem_limit_bytes=32 * 1024 * 1024),
        cost_estimate=pl.CostEstimate(flops=flops, transcendentals=b_pad,
                                      bytes_accessed=bytes_accessed),
    )(scalars, x, wft, w1t, b1c, w2t, b2c, wo_col)

    return out[0, :B].reshape(B, 1)


# --------------------------- parameter creation -----------------------------
def _xavier_uniform(key, shape):
    fan_in, fan_out = shape[0], shape[1]
    limit = (6.0 / (fan_in + fan_out)) ** 0.5
    return jax.random.uniform(key, shape, jnp.float32, -limit, limit)


def init_params(key):
    D, E = TOTAL_DIM, EMBEDDING_SIZE
    F = NUM_FIELDS
    H1, H2 = HIDDEN_DIMS
    ks = jax.random.split(key, 12)
    return {
        # FM
        "lin_w": _xavier_uniform(ks[0], (D, 1)),       # Linear(D,1) weight, transposed
        "lin_b": jnp.zeros((1, 1), jnp.float32),
        "v":     _xavier_uniform(ks[1], (D, E)),
        # DeepFM embedding table (used as a matmul in the dense path)
        "emb_w": _xavier_uniform(ks[2], (D, E)),
        # Deep MLP (weights stored as (in, out))
        "w1": _xavier_uniform(ks[3], (E * F, H1)),
        "b1": 0.01 * jax.random.normal(ks[4], (1, H1), jnp.float32),
        "w2": _xavier_uniform(ks[5], (H1, H2)),
        "b2": 0.01 * jax.random.normal(ks[6], (1, H2), jnp.float32),
        # Output layer Linear(H2+1, 1)
        "w_out": _xavier_uniform(ks[7], (H2 + 1, 1)),
        "b_out": jnp.zeros((1, 1), jnp.float32),
    }


# ------------------------------ pure-JAX ref --------------------------------
def deepfm_reference(x, params):
    x = x.astype(jnp.float32)
    linear_part = x @ params["lin_w"] + params["lin_b"][0, 0]
    sum_emb = 0.0
    sum_sq = 0.0
    deep_parts = []
    for (s, d) in _FIELD_SLICES:
        xf = x[:, s:s + d]
        ef = xf @ params["v"][s:s + d, :]
        sum_emb = sum_emb + ef
        sum_sq = sum_sq + ef * ef
        deep_parts.append(xf @ params["emb_w"][s:s + d, :])
    interaction = 0.5 * jnp.sum(sum_emb ** 2 - sum_sq, axis=1, keepdims=True)
    fm_out = linear_part + interaction
    h = jnp.concatenate(deep_parts, axis=1)
    h = jnp.maximum(h @ params["w1"] + params["b1"], 0.0)
    h = jnp.maximum(h @ params["w2"] + params["b2"], 0.0)
    concat = jnp.concatenate([fm_out, h], axis=1)
    logits = concat @ params["w_out"] + params["b_out"][0, 0]
    return jax.nn.sigmoid(logits)


# --------------------------------- main -------------------------------------
if __name__ == "__main__":
    key = jax.random.PRNGKey(0)
    k_param, k_x1, k_x2 = jax.random.split(key, 3)

    params = init_params(k_param)

    # Small batch: single tile (tile_b == 8, block == full array).
    B_small = 8
    x_small = jax.random.normal(k_x1, (B_small, TOTAL_DIM), jnp.float32)
    out_small = jax.block_until_ready(deepfm_forward(x_small, params))
    ref_small = deepfm_reference(x_small, params)
    assert out_small.shape == (B_small, 1)
    assert jnp.allclose(out_small, ref_small, atol=5e-5, rtol=5e-5), (
        out_small, ref_small)

    # Mid-sized, non-multiple-of-tile batch: exercises the 2-tile "parallel"
    # grid (2 tiles of 256) and the batch padding path.
    B_big = 300
    x_big = jax.random.normal(k_x2, (B_big, TOTAL_DIM), jnp.float32)
    out_big = jax.block_until_ready(deepfm_forward(x_big, params))
    ref_big = deepfm_reference(x_big, params)
    assert out_big.shape == (B_big, 1)
    assert jnp.allclose(out_big, ref_big, atol=5e-5, rtol=5e-5)

    print("KERNEL_OK")
</pallas_src>

<mosaic_0001>
module attributes {stable_mosaic.version = 11 : i64} {
  func.func @_deepfm_kernel(%arg0: i32, %arg1: memref<3xf32, #tpu.memory_space<smem>>, %arg2: memref<8x64xf32, #tpu.memory_space<vmem>>, %arg3: memref<296x64xf32, #tpu.memory_space<vmem>>, %arg4: memref<64x128xf32, #tpu.memory_space<vmem>>, %arg5: memref<64x1xf32, #tpu.memory_space<vmem>>, %arg6: memref<32x64xf32, #tpu.memory_space<vmem>>, %arg7: memref<32x1xf32, #tpu.memory_space<vmem>>, %arg8: memref<32x1xf32, #tpu.memory_space<vmem>>, %arg9: memref<1x8xf32, #tpu.memory_space<vmem>>) attributes {dimension_semantics = [#tpu.dimension_semantics<parallel>], iteration_bounds = array<i64: 1>, scalar_prefetch = 0 : i64, scratch_operands = 0 : i64, tpu.core_type = #tpu.core_type<tc>, window_params = [{transform_indices = @transform_0, window_bounds = array<i64: 3>}, {transform_indices = @transform_1, window_bounds = array<i64: 8, 64>}, {pipeline_mode = #tpu.pipeline_mode<synchronous>, transform_indices = @transform_2, window_bounds = array<i64: 296, 64>}, {pipeline_mode = #tpu.pipeline_mode<synchronous>, transform_indices = @transform_3, window_bounds = array<i64: 64, 128>}, {pipeline_mode = #tpu.pipeline_mode<synchronous>, transform_indices = @transform_4, window_bounds = array<i64: 64, 1>}, {pipeline_mode = #tpu.pipeline_mode<synchronous>, transform_indices = @transform_5, window_bounds = array<i64: 32, 64>}, {pipeline_mode = #tpu.pipeline_mode<synchronous>, transform_indices = @transform_6, window_bounds = array<i64: 32, 1>}, {pipeline_mode = #tpu.pipeline_mode<synchronous>, transform_indices = @transform_7, window_bounds = array<i64: 32, 1>}, {transform_indices = @transform_8, window_bounds = array<i64: 1, 8>}]} {
    %c0 = arith.constant 0 : index
    %c0_0 = arith.constant 0 : index
    %0 = vector.load %arg2[%c0, %c0_0] : memref<8x64xf32, #tpu.memory_space<vmem>>, vector<8x64xf32>
    %c0_1 = arith.constant 0 : index
    %c0_2 = arith.constant 0 : index
    %1 = vector.load %arg3[%c0_1, %c0_2] : memref<296x64xf32, #tpu.memory_space<vmem>>, vector<296x64xf32>
    %cst = arith.constant dense<0.000000e+00> : vector<296x8xf32>
    %2 = tpu.matmul %1, %0, %cst {dimension_numbers = #tpu.dot_dimension_numbers<[1], [1], [0], [0], [0, 0, 1, 0], [], []>} : vector<296x64xf32>, vector<8x64xf32>, vector<296x8xf32> -> vector<296x8xf32>
    %3 = vector.extract_strided_slice %2 {offsets = [0, 0], sizes = [128, 8], strides = [1, 1]} : vector<296x8xf32> to vector<128x8xf32>
    %4 = vector.extract_strided_slice %2 {offsets = [128, 0], sizes = [128, 8], strides = [1, 1]} : vector<296x8xf32> to vector<128x8xf32>
    %5 = vector.extract_strided_slice %2 {offsets = [256, 0], sizes = [32, 8], strides = [1, 1]} : vector<296x8xf32> to vector<32x8xf32>
    %6 = vector.extract_strided_slice %2 {offsets = [288, 0], sizes = [1, 8], strides = [1, 1]} : vector<296x8xf32> to vector<1x8xf32>
    %c0_3 = arith.constant 0 : index
    %7 = memref.load %arg1[%c0_3] : memref<3xf32, #tpu.memory_space<smem>>
    %c1 = arith.constant 1 : index
    %8 = memref.load %arg1[%c1] : memref<3xf32, #tpu.memory_space<smem>>
    %c2 = arith.constant 2 : index
    %9 = memref.load %arg1[%c2] : memref<3xf32, #tpu.memory_space<smem>>
    %10 = arith.mulf %5, %5 : vector<32x8xf32>
    %cst_4 = arith.constant dense<0.000000e+00> : vector<8xf32>
    %11 = vector.multi_reduction <add>, %10, %cst_4 [0] : vector<32x8xf32> to vector<8xf32>
    %12 = vector.shape_cast %11 : vector<8xf32> to vector<1x8xf32>
    %13 = arith.mulf %3, %3 : vector<128x8xf32>
    %cst_5 = arith.constant dense<0.000000e+00> : vector<8xf32>
    %14 = vector.multi_reduction <add>, %13, %cst_5 [0] : vector<128x8xf32> to vector<8xf32>
    %15 = vector.shape_cast %14 : vector<8xf32> to vector<1x8xf32>
    %16 = arith.subf %12, %15 : vector<1x8xf32>
    %cst_6 = arith.constant 5.000000e-01 : f32
    %17 = vector.broadcast %cst_6 : f32 to vector<1x8xf32>
    %18 = arith.mulf %17, %16 : vector<1x8xf32>
    %19 = vector.broadcast %7 : f32 to vector<1x8xf32>
    %20 = arith.addf %6, %19 : vector<1x8xf32>
    %21 = arith.addf %20, %18 : vector<1x8xf32>
    %c0_7 = arith.constant 0 : index
    %c0_8 = arith.constant 0 : index
    %22 = vector.load %arg4[%c0_7, %c0_8] : memref<64x128xf32, #tpu.memory_space<vmem>>, vector<64x128xf32>
    %cst_9 = arith.constant dense<0.000000e+00> : vector<64x8xf32>
    %23 = tpu.matmul %22, %4, %cst_9 {dimension_numbers = #tpu.dot_dimension_numbers<[1], [0], [0], [1], [0, 0, 1, 1], [], []>} : vector<64x128xf32>, vector<128x8xf32>, vector<64x8xf32> -> vector<64x8xf32>
    %c0_10 = arith.constant 0 : index
    %c0_11 = arith.constant 0 : index
    %24 = vector.load %arg5[%c0_10, %c0_11] : memref<64x1xf32, #tpu.memory_space<vmem>>, vector<64x1xf32>
    %25 = vector.broadcast %24 : vector<64x1xf32> to vector<64x8xf32>
    %26 = arith.addf %23, %25 : vector<64x8xf32>
    %cst_12 = arith.constant 0.000000e+00 : f32
    %27 = vector.broadcast %cst_12 : f32 to vector<64x8xf32>
    %28 = arith.maximumf %26, %27 : vector<64x8xf32>
    %c0_13 = arith.constant 0 : index
    %c0_14 = arith.constant 0 : index
    %29 = vector.load %arg6[%c0_13, %c0_14] : memref<32x64xf32, #tpu.memory_space<vmem>>, vector<32x64xf32>
    %cst_15 = arith.constant dense<0.000000e+00> : vector<32x8xf32>
    %30 = tpu.matmul %29, %28, %cst_15 {dimension_numbers = #tpu.dot_dimension_numbers<[1], [0], [0], [1], [0, 0, 1, 1], [], []>} : vector<32x64xf32>, vector<64x8xf32>, vector<32x8xf32> -> vector<32x8xf32>
    %c0_16 = arith.constant 0 : index
    %c0_17 = arith.constant 0 : index
    %31 = vector.load %arg7[%c0_16, %c0_17] : memref<32x1xf32, #tpu.memory_space<vmem>>, vector<32x1xf32>
    %32 = vector.broadcast %31 : vector<32x1xf32> to vector<32x8xf32>
    %33 = arith.addf %30, %32 : vector<32x8xf32>
    %cst_18 = arith.constant 0.000000e+00 : f32
    %34 = vector.broadcast %cst_18 : f32 to vector<32x8xf32>
    %35 = arith.maximumf %33, %34 : vector<32x8xf32>
    %c0_19 = arith.constant 0 : index
    %c0_20 = arith.constant 0 : index
    %36 = vector.load %arg8[%c0_19, %c0_20] : memref<32x1xf32, #tpu.memory_space<vmem>>, vector<32x1xf32>
    %37 = vector.broadcast %36 : vector<32x1xf32> to vector<32x8xf32>
    %38 = arith.mulf %35, %37 : vector<32x8xf32>
    %cst_21 = arith.constant dense<0.000000e+00> : vector<8xf32>
    %39 = vector.multi_reduction <add>, %38, %cst_21 [0] : vector<32x8xf32> to vector<8xf32>
    %40 = vector.shape_cast %39 : vector<8xf32> to vector<1x8xf32>
    %41 = vector.broadcast %9 : f32 to vector<1x8xf32>
    %42 = arith.mulf %41, %21 : vector<1x8xf32>
    %43 = arith.addf %42, %40 : vector<1x8xf32>
    %44 = vector.broadcast %8 : f32 to vector<1x8xf32>
    %45 = arith.addf %43, %44 : vector<1x8xf32>
    %46 = arith.negf %45 : vector<1x8xf32>
    %47 = math.exp %46 : vector<1x8xf32>
    %cst_22 = arith.constant 1.000000e+00 : f32
    %48 = vector.broadcast %cst_22 : f32 to vector<1x8xf32>
    %49 = arith.addf %48, %47 : vector<1x8xf32>
    %50 = arith.divf %48, %49 : vector<1x8xf32>
    %c0_23 = arith.constant 0 : index
    %c0_24 = arith.constant 0 : index
    %51 = vector.load %arg9[%c0_23, %c0_24] : memref<1x8xf32, #tpu.memory_space<vmem>>, vector<1x8xf32>
    tpu.vector_store %arg9[%c0_23, %c0_24], %50 {strides = array<i32>} : memref<1x8xf32, #tpu.memory_space<vmem>>, vector<1x8xf32>,
    return
  }
  func.func @transform_0(%arg0: i32) -> i32 {
    %c0_i32 = arith.constant 0 : i32
    %c0_i32_0 = arith.constant 0 : i32
    return %c0_i32 : i32
  }
  func.func @transform_1(%arg0: i32) -> (i32, i32) {
    %c0_i32 = arith.constant 0 : i32
    %c0_i32_0 = arith.constant 0 : i32
    return %arg0, %c0_i32 : i32, i32
  }
  func.func @transform_2(%arg0: i32) -> (i32, i32) {
    %c0_i32 = arith.constant 0 : i32
    %c0_i32_0 = arith.constant 0 : i32
    %c0_i32_1 = arith.constant 0 : i32
    return %c0_i32, %c0_i32_0 : i32, i32
  }
  func.func @transform_3(%arg0: i32) -> (i32, i32) {
    %c0_i32 = arith.constant 0 : i32
    %c0_i32_0 = arith.constant 0 : i32
    %c0_i32_1 = arith.constant 0 : i32
    return %c0_i32, %c0_i32_0 : i32, i32
  }
  func.func @transform_4(%arg0: i32) -> (i32, i32) {
    %c0_i32 = arith.constant 0 : i32
    %c0_i32_0 = arith.constant 0 : i32
    %c0_i32_1 = arith.constant 0 : i32
    return %c0_i32, %c0_i32_0 : i32, i32
  }
  func.func @transform_5(%arg0: i32) -> (i32, i32) {
    %c0_i32 = arith.constant 0 : i32
    %c0_i32_0 = arith.constant 0 : i32
    %c0_i32_1 = arith.constant 0 : i32
    return %c0_i32, %c0_i32_0 : i32, i32
  }
  func.func @transform_6(%arg0: i32) -> (i32, i32) {
    %c0_i32 = arith.constant 0 : i32
    %c0_i32_0 = arith.constant 0 : i32
    %c0_i32_1 = arith.constant 0 : i32
    return %c0_i32, %c0_i32_0 : i32, i32
  }
  func.func @transform_7(%arg0: i32) -> (i32, i32) {
    %c0_i32 = arith.constant 0 : i32
    %c0_i32_0 = arith.constant 0 : i32
    %c0_i32_1 = arith.constant 0 : i32
    return %c0_i32, %c0_i32_0 : i32, i32
  }
  func.func @transform_8(%arg0: i32) -> (i32, i32) {
    %c0_i32 = arith.constant 0 : i32
    %c0_i32_0 = arith.constant 0 : i32
    return %c0_i32, %arg0 : i32, i32
  }
}

</mosaic_0001>

<bundles_post_ra>
// kernel: deepfm_forward.1
= control target key start
LH: loop header
LB: loop body
LE: loop exit
PB: predicated region body
PF: predicated region fallthrough
CT: control target
= control target key end

     0   :  { %13 = vsyncpa [#allocation4], 0  ;;  %s1109_s0 = inlined_call_operand.vmem [shape: f32[3], index: 0, kind: input, shape index: {}]   ;;  %s1110_s1 = inlined_call_operand.vmem [shape: f32[8,64], index: 1, kind: input, shape index: {}]   ;;  %s1111_s2 = inlined_call_operand.vmem [shape: f32[296,64], index: 2, kind: input, shape index: {}]   ;;  %s1112_s3 = inlined_call_operand.vmem [shape: f32[64,128], index: 3, kind: input, shape index: {}]   ;;  %s1113_s4 = inlined_call_operand.vmem [shape: f32[64,1], index: 4, kind: input, shape index: {}]   ;;  %s1114_s5 = inlined_call_operand.vmem [shape: f32[32,64], index: 5, kind: input, shape index: {}]   ;;  %s1115_s6 = inlined_call_operand.vmem [shape: f32[32,1], index: 6, kind: input, shape index: {}]   ;;  %s1116_s7 = inlined_call_operand.vmem [shape: f32[32,1], index: 7, kind: input, shape index: {}]   ;;  %s1117_s8 = inlined_call_operand.hbm [shape: f32[1,8], index: 8, kind: output, shape index: {}]  }
   0x1   :  { %14 = vsyncpa [#allocation3], 0  ;;  %s20_s29 = sshll.u32 %s1109_s0, 4  ;;  %s762_s30 = smov [#allocation2]   ;;  %s21_s29 = int_to_ptr.vmem [resolvable:$true] %s20_s29 }
   0x2   :  { %23 = dma.vmem_to_smem %s21_s29, 16, %s762_s30, [#allocation4]  }
   0x3   :  { %758 = dma.done.wait [#allocation4], 16  }
   0x4   :  { %759 = vsyncadd [#allocation4], 4294967280 }
   0x5   :  { %42 = sfence }
   0x6   :  { %v43_v0 = vld [vmem:[%s1110_s1] sm:$0xff]  ;;  %vm81_vm0 = vcmask 523264   ;;  %v67_v2 = vld [vmem:[%s1111_s2 + $0xb8] sm:$0xff]  ;;  %v58_v3 = vld [vmem:[%s1111_s2 + $0x70] sm:$0xff]  ;;  %vm331_vm1 = vcmask 64512   ;;  %s704_s13 = sld [smem:[#allocation2 + $0x2]] }
   0x7   :  { %665 = vmatpush.xpose.msk.msra.mxu0 %vm81_vm0, %v43_v0  ;;  %711 = vmatpush.xpose.msk.msra.mxu3 %vm81_vm0, %v43_v0  ;;  %v44_v1 = vld [vmem:[%s1111_s2] sm:$0xff]  ;;  %v45_v4 = vld [vmem:[%s1111_s2 + $0x8] sm:$0xff]  ;;  %v59_v6 = vld [vmem:[%s1111_s2 + $0x78] sm:$0xff]  ;;  %s703_s14 = sld [smem:[#allocation2 + $0x1]]  ;;  %s764_s15 = smov [#allocation5]   ;;  %vm646_vm5 = vcmask 57344  }
   0x8   :  { %710 = vmatpush.xpose.msk.msra.mxu2 %vm81_vm0, %v43_v0  ;;  %v68_v5 = vld [vmem:[%s1111_s2 + $0xc0] sm:$0xff]  ;;  %v46_v7 = vld [vmem:[%s1111_s2 + $0x10] sm:$0xff]  ;;  %v69_v8 = vld [vmem:[%s1111_s2 + $0xc8] sm:$0xff]  ;;  %s653_s1 = sshll.u32 %s764_s15, 4  ;;  %s655_s17 = sshll.u32 %s1117_s8, 4  ;;  %s654_s1 = int_to_ptr.vmem [resolvable:$true] %s653_s1  ;;  %s656_s17 = int_to_ptr.hbm [resolvable:$true] %s655_s17 }
   0x9   :  { %v60_v9 = vld [vmem:[%s1111_s2 + $0x80] sm:$0xff]  ;;  %v47_v10 = vld [vmem:[%s1111_s2 + $0x18] sm:$0xff]  ;;  %v70_v11 = vld [vmem:[%s1111_s2 + $0xd0] sm:$0xff] }
   0xa   :  { %666 = vmatmul.msk.f32.vlgmr.msra.gmra.mxu0 %vm81_vm0, %v44_v1  ;;  %689 = vmatmul.msk.f32.vlgmr.msra.gmra.mxu3 %vm81_vm0, %v67_v2  ;;  %v61_v12 = vld [vmem:[%s1111_s2 + $0x88] sm:$0xff]  ;;  %v48_v13 = vld [vmem:[%s1111_s2 + $0x20] sm:$0xff]  ;;  %v71_v14 = vld [vmem:[%s1111_s2 + $0xd8] sm:$0xff] }
   0xb   :  { %680 = vmatmul.msk.f32.vlgmr.msra.gmra.mxu2 %vm81_vm0, %v58_v3  ;;  %v62_v15 = vld [vmem:[%s1111_s2 + $0x90] sm:$0xff]  ;;  %v49_v16 = vld [vmem:[%s1111_s2 + $0x28] sm:$0xff]  ;;  %v72_v17 = vld [vmem:[%s1111_s2 + $0xe0] sm:$0xff] }
   0xc   :  { %v63_v18 = vld [vmem:[%s1111_s2 + $0x98] sm:$0xff]  ;;  %v50_v19 = vld [vmem:[%s1111_s2 + $0x30] sm:$0xff]  ;;  %v73_v20 = vld [vmem:[%s1111_s2 + $0xe8] sm:$0xff] }
   0xd   :  { %v64_v21 = vld [vmem:[%s1111_s2 + $0xa0] sm:$0xff]  ;;  %v51_v22 = vld [vmem:[%s1111_s2 + $0x38] sm:$0xff]  ;;  %v74_v23 = vld [vmem:[%s1111_s2 + $0xf0] sm:$0xff] }
   0xe   :  { %v65_v24 = vld [vmem:[%s1111_s2 + $0xa8] sm:$0xff]  ;;  %v52_v25 = vld [vmem:[%s1111_s2 + $0x40] sm:$0xff]  ;;  %v75_v26 = vld [vmem:[%s1111_s2 + $0xf8] sm:$0xff] }
   0xf   :  { %v66_v27 = vld [vmem:[%s1111_s2 + $0xb0] sm:$0xff]  ;;  %v53_v28 = vld [vmem:[%s1111_s2 + $0x48] sm:$0xff]  ;;  %v76_v29 = vld [vmem:[%s1111_s2 + $0x100] sm:$0xff] }
  0x10   :  { %v54_v30 = vld [vmem:[%s1111_s2 + $0x50] sm:$0xff]  ;;  %v77_v31 = vld [vmem:[%s1111_s2 + $0x108] sm:$0xff]  ;;  %v55_v32 = vld [vmem:[%s1111_s2 + $0x58] sm:$0xff] }
  0x11   :  { %v78_v33 = vld [vmem:[%s1111_s2 + $0x110] sm:$0xff]  ;;  %v56_v34 = vld [vmem:[%s1111_s2 + $0x60] sm:$0xff]  ;;  %v79_v35 = vld [vmem:[%s1111_s2 + $0x118] sm:$0xff] }
  0x12   :  { %667 = vmatmul.msk.f32.gmra.mxu0 %vm81_vm0, %v45_v4  ;;  %690 = vmatmul.msk.f32.gmra.mxu3 %vm81_vm0, %v68_v5  ;;  %v57_v36 = vld [vmem:[%s1111_s2 + $0x68] sm:$0xff]  ;;  %v80_v37 = vld [vmem:[%s1111_s2 + $0x120] sm:$0xff] }
  0x13   :  { %681 = vmatmul.msk.f32.gmra.mxu2 %vm81_vm0, %v59_v6  ;;  %v763_v6 = vmov 0  }
  0x14   :  { %716 = vset.pattern.permute.xlu1 %v763_v6  ;;  %715 = vset.pattern.permute.xlu0 %v763_v6 }
  0x15   :  { %717 = vset.pattern.permute.xlu2 %v763_v6  ;;  %v407_v6 = vld [vmem:[%s1112_s3 + $0x20] sm:$0xff] }
  0x1a   :  { %668 = vmatmul.msk.f32.gmra.mxu0 %vm81_vm0, %v46_v7  ;;  %691 = vmatmul.msk.f32.gmra.mxu3 %vm81_vm0, %v69_v8  ;;  %v416_v7 = vld [vmem:[%s1113_s4 + $0x28] sm:$0xff] }
  0x1b   :  { %682 = vmatmul.msk.f32.gmra.mxu2 %vm81_vm0, %v60_v9  ;;  %446 = vperm.xlu1 %716, %v416_v7   ;;  %v582_v7 = vld [vmem:[%s1116_s7 + $0x8] sm:$0xff] }
  0x22   :  { %669 = vmatmul.msk.f32.gmra.mxu0 %vm81_vm0, %v47_v10  ;;  %692 = vmatmul.msk.f32.gmra.mxu3 %vm81_vm0, %v70_v11 }
  0x23   :  { %683 = vmatmul.msk.f32.gmra.mxu2 %vm81_vm0, %v61_v12 }
  0x2a   :  { %670 = vmatmul.msk.f32.gmra.mxu0 %vm81_vm0, %v48_v13  ;;  %693 = vmatmul.msk.f32.gmra.mxu3 %vm81_vm0, %v71_v14 }
  0x2b   :  { %684 = vmatmul.msk.f32.gmra.mxu2 %vm81_vm0, %v62_v15 }
  0x32   :  { %671 = vmatmul.msk.f32.gmra.mxu0 %vm81_vm0, %v49_v16  ;;  %694 = vmatmul.msk.f32.gmra.mxu3 %vm81_vm0, %v72_v17  ;;  %v418_v17 = vld [vmem:[%s1113_s4 + $0x38] sm:$0xff] }
  0x33   :  { %685 = vmatmul.msk.f32.gmra.mxu2 %vm81_vm0, %v63_v18  ;;  %v415_v18 = vld [vmem:[%s1113_s4 + $0x20] sm:$0xff]  ;;  %456 = vperm.xlu0 %715, %v418_v17  }
  0x34   :  { %441 = vperm.xlu1 %716, %v415_v18  }
  0x3a   :  { %672 = vmatmul.msk.f32.gmra.mxu0 %vm81_vm0, %v50_v19  ;;  %695 = vmatmul.msk.f32.gmra.mxu3 %vm81_vm0, %v73_v20 }
  0x3b   :  { %686 = vmatmul.msk.f32.gmra.mxu2 %vm81_vm0, %v64_v21 }
  0x42   :  { %673 = vmatmul.msk.f32.gmra.mxu0 %vm81_vm0, %v51_v22  ;;  %696 = vmatmul.msk.f32.gmra.mxu3 %vm81_vm0, %v74_v23 }
  0x43   :  { %687 = vmatmul.msk.f32.gmra.mxu2 %vm81_vm0, %v65_v24 }
  0x4a   :  { %674 = vmatmul.msk.f32.gmra.mxu0 %vm81_vm0, %v52_v25  ;;  %697 = vmatmul.msk.f32.gmra.mxu3 %vm81_vm0, %v75_v26 }
  0x4b   :  { %688 = vmatmul.msk.f32.gmra.mxu2 %vm81_vm0, %v66_v27  ;;  %v417_v27 = vld [vmem:[%s1113_s4 + $0x30] sm:$0xff] }
  0x4c   :  { %451 = vperm.xlu0 %715, %v417_v27  }
  0x52   :  { %675 = vmatmul.msk.f32.gmra.mxu0 %vm81_vm0, %v53_v28  ;;  %698 = vmatmul.msk.f32.gmra.mxu3 %vm81_vm0, %v76_v29  ;;  %v411_v28 = vld [vmem:[%s1113_s4] sm:$0xff] }
  0x53   :  { %421 = vperm.xlu1 %716, %v411_v28  }
  0x5a   :  { %676 = vmatmul.msk.f32.gmra.mxu0 %vm81_vm0, %v54_v30  ;;  %699 = vmatmul.msk.f32.gmra.mxu3 %vm81_vm0, %v77_v31 }
  0x62   :  { %677 = vmatmul.msk.f32.gmra.mxu0 %vm81_vm0, %v55_v32  ;;  %700 = vmatmul.msk.f32.gmra.mxu3 %vm81_vm0, %v78_v33 }
  0x6a   :  { %678 = vmatmul.msk.f32.gmra.mxu0 %vm81_vm0, %v56_v34  ;;  %701 = vmatmul.msk.f32.gmra.mxu3 %vm81_vm0, %v79_v35  ;;  %v412_v35 = vld [vmem:[%s1113_s4 + $0x8] sm:$0xff] }
  0x6b   :  { %426 = vperm.xlu0 %715, %v412_v35  }
  0x72   :  { %679 = vmatmul.msk.f32.gmra.mxu0 %vm81_vm0, %v57_v36  ;;  %702 = vmatmul.msk.f32.gmra.mxu3 %vm81_vm0, %v80_v37 }
  0x87   :  { %v213_v38 = vpop.f32.mrf.mxu0 }
  0x88   :  { %v345_v39 = vmul.f32 %v213_v38, %v213_v38 }
  0x8a   :  { %v361_v43 = vsel %vm331_vm1, %v345_v39, 0.0 }
  0x8d   :  { %v967_v40 = vpop.f32.mrf.mxu3 }
  0x8e   :  { %v969_v41 = vpop.f32.mrf.mxu2 }
  0x8f   :  { %v216_v42 = vpop.f32.mrf.mxu0 }
  0x90   :  { %v346_v44 = vmul.f32 %v216_v42, %v216_v42 }
  0x92   :  { %v362_v45 = vsel %vm331_vm1, %v346_v44, 0.0 }
  0x93   :  { %v363_v46 = vadd.f32 %v362_v45, %v361_v43 }
  0x95   :  { %v973_v47 = vpop.f32.mrf.mxu3 }
  0x96   :  { %v975_v49 = vpop.f32.mrf.mxu2 }
  0x97   :  { %v219_v48 = vpop.f32.mrf.mxu0 }
  0x98   :  { %v347_v50 = vmul.f32 %v219_v48, %v219_v48 }
  0x9a   :  { %v364_v51 = vsel %vm331_vm1, %v347_v50, 0.0 }
  0x9b   :  { %v365_v52 = vadd.f32 %v364_v51, %v363_v46 }
  0x9d   :  { %v288_v53 = vpop.f32.mrf.mxu3 }
  0x9e   :  { %v978_v55 = vpop.f32.mrf.mxu2 }
  0x9f   :  { %v222_v54 = vpop.f32.mrf.mxu0 }
  0xa0   :  { %v348_v3 = vmul.f32 %v222_v54, %v222_v54  ;;  %v359_v54 = vmul.f32 %v969_v41, %v969_v41 }
  0xa2   :  { %v366_v8 = vsel %vm331_vm1, %v348_v3, 0.0  ;;  %v406_v3 = vld [vmem:[%s1112_s3 + $0x18] sm:$0xff] }
  0xa3   :  { %v367_v11 = vadd.f32 %v366_v8, %v365_v52  ;;  %v408_v8 = vld [vmem:[%s1112_s3 + $0x28] sm:$0xff] }
  0xa5   :  { %v291_v56 = vpop.f32.mrf.mxu3 }
  0xa6   :  { %v980_v58 = vpop.f32.mrf.mxu2 }
  0xa7   :  { %v225_v57 = vpop.f32.mrf.mxu0 }
  0xa8   :  { %v349_v9 = vmul.f32 %v225_v57, %v225_v57  ;;  %v360_v57 = vmul.f32 %v975_v49, %v975_v49  ;;  %v513_v49 = vld [vmem:[%s1115_s6 + $0x8] sm:$0xff] }
  0xa9   :  { %523 = vperm.xlu0 %715, %v513_v49  }
  0xaa   :  { %v368_v12 = vsel %vm331_vm1, %v349_v9, 0.0  ;;  %v390_v41 = vsel %vm331_vm1, %v360_v57, 0.0  ;;  %v512_v9 = vld [vmem:[%s1115_s6] sm:$0xff] }
  0xab   :  { %v369_v15 = vadd.f32 %v368_v12, %v367_v11  ;;  %v515_v11 = vld [vmem:[%s1115_s6 + $0x18] sm:$0xff] }
  0xac   :  { %v410_v12 = vld [vmem:[%s1112_s3 + $0x38] sm:$0xff] }
  0xad   :  { %v294_v59 = vpop.f32.mrf.mxu3 }
  0xae   :  { %v982_v62 = vpop.f32.mrf.mxu2 }
  0xaf   :  { %v228_v60 = vpop.f32.mrf.mxu0 }
  0xb0   :  { %v350_v13 = vmul.f32 %v228_v60, %v228_v60 }
  0xb2   :  { %v370_v19 = vsel %vm331_vm1, %v350_v13, 0.0  ;;  %v583_v13 = vld [vmem:[%s1116_s7 + $0x10] sm:$0xff] }
  0xb3   :  { %v371_v21 = vadd.f32 %v370_v19, %v369_v15 }
  0xb5   :  { %v297_v61 = vpop.f32.mrf.mxu3 }
  0xb6   :  { %v270_v2 = vpop.f32.mrf.mxu2 }
  0xb7   :  { %v231_v63 = vpop.f32.mrf.mxu0 }
  0xb8   :  { %v351_v20 = vmul.f32 %v231_v63, %v231_v63 }
  0xba   :  { %v372_v23 = vsel %vm331_vm1, %v351_v20, 0.0  ;;  %v457_v20 = vpop.permute.xlu0 %456 }
  0xbb   :  { %v373_v25 = vadd.f32 %v372_v23, %v371_v21  ;;  %v447_v21 = vpop.permute.xlu1 %446 }
  0xbd   :  { %v300_v0 = vpop.f32.mrf.mxu3 }
  0xbe   :  { %v273_v10 = vpop.f32.mrf.mxu2 }
  0xbf   :  { %v234_v1 = vpop.f32.mrf.mxu0 }
  0xc0   :  { %v352_v24 = vmul.f32 %v234_v1, %v234_v1  ;;  %v413_v1 = vld [vmem:[%s1113_s4 + $0x10] sm:$0xff] }
  0xc2   :  { %v374_v29 = vsel %vm331_vm1, %v352_v24, 0.0  ;;  %v452_v24 = vpop.permute.xlu0 %451 }
  0xc3   :  { %v375_v31 = vadd.f32 %v374_v29, %v373_v25  ;;  %v442_v25 = vpop.permute.xlu1 %441 }
  0xc5   :  { %v303_v4 = vpop.f32.mrf.mxu3 }
  0xc6   :  { %v276_v22 = vpop.f32.mrf.mxu2 }
  0xc7   :  { %v237_v5 = vpop.f32.mrf.mxu0 }
  0xc8   :  { %v353_v30 = vmul.f32 %v237_v5, %v237_v5  ;;  %v584_v5 = vld [vmem:[%s1116_s7 + $0x18] sm:$0xff] }
  0xca   :  { %v376_v32 = vsel %vm331_vm1, %v353_v30, 0.0 }
  0xcb   :  { %v377_v36 = vadd.f32 %v376_v32, %v375_v31 }
  0xcd   :  { %v306_v14 = vpop.f32.mrf.mxu3 }
  0xce   :  { %459 = vmatpush.msra.mxu1 %v306_v14  ;;  %v279_v34 = vpop.f32.mrf.mxu2 }
  0xcf   :  { %v240_v16 = vpop.f32.mrf.mxu0 }
  0xd0   :  { %460 = vmatpush.msra.mxu1 %v303_v4  ;;  %v354_v33 = vmul.f32 %v240_v16, %v240_v16  ;;  %v514_v4 = vld [vmem:[%s1115_s6 + $0x10] sm:$0xff] }
  0xd1   :  { %528 = vperm.xlu1 %716, %v514_v4  }
  0xd2   :  { %461 = vmatpush.msra.mxu1 %v300_v0  ;;  %v378_v38 = vsel %vm331_vm1, %v354_v33, 0.0  ;;  %v405_v0 = vld [vmem:[%s1112_s3 + $0x10] sm:$0xff] }
  0xd3   :  { %v379_v42 = vadd.f32 %v378_v38, %v377_v36 }
  0xd4   :  { %462 = vmatpush.msra.mxu1 %v297_v61  ;;  %v388_v61 = vsel %vm331_vm1, %v359_v54, 0.0 }
  0xd6   :  { %463 = vmatpush.msra.mxu1 %v294_v59  ;;  %v404_v59 = vld [vmem:[%s1112_s3 + $0x8] sm:$0xff] }
  0xd7   :  { %v243_v26 = vpop.f32.mrf.mxu0 }
  0xd8   :  { %464 = vmatpush.msra.mxu1 %v291_v56  ;;  %v355_v39 = vmul.f32 %v243_v26, %v243_v26 }
  0xd9   :  { %592 = vperm.xlu1 %716, %v582_v7  }
  0xda   :  { %465 = vmatpush.msra.mxu1 %v288_v53  ;;  %v380_v43 = vsel %vm331_vm1, %v355_v39, 0.0  ;;  %v422_v39 = vpop.permute.xlu1 %421 }
  0xdb   :  { %v381_v45 = vadd.f32 %v380_v43, %v379_v42 }
  0xdc   :  { %466 = vmatpush.msra.mxu1 %v973_v47 }
  0xdd   :  { %v427_v36 = vpop.permute.xlu0 %426 }
  0xde   :  { %467 = vmatpush.msra.mxu1 %v967_v40  ;;  %v403_v40 = vld [vmem:[%s1112_s3] sm:$0xff] }
  0xdf   :  { %v246_v37 = vpop.f32.mrf.mxu0 }
  0xe0   :  { %468 = vmatpush.msra.mxu1 %v279_v34  ;;  %v356_v44 = vmul.f32 %v246_v37, %v246_v37 }
  0xe2   :  { %469 = vmatpush.msra.mxu1 %v276_v22  ;;  %v382_v47 = vsel %vm331_vm1, %v356_v44, 0.0 }
  0xe3   :  { %v383_v50 = vadd.f32 %v382_v47, %v381_v45 }
  0xe4   :  { %470 = vmatpush.msra.mxu1 %v273_v10  ;;  %v409_v10 = vld [vmem:[%s1112_s3 + $0x30] sm:$0xff] }
  0xe6   :  { %471 = vmatpush.msra.mxu1 %v270_v2  ;;  %v581_v2 = vld [vmem:[%s1116_s7] sm:$0xff] }
  0xe7   :  { %v249_v46 = vpop.f32.mrf.mxu0  ;;  %587 = vperm.xlu0 %715, %v581_v2  }
  0xe8   :  { %v357_v48 = vmul.f32 %v249_v46, %v249_v46  ;;  %472 = vmatpush.msra.mxu1 %v982_v62  ;;  %v414_v62 = vld [vmem:[%s1113_s4 + $0x18] sm:$0xff] }
  0xe9   :  { %436 = vperm.xlu2 %717, %v414_v62  }
  0xea   :  { %473 = vmatpush.msra.mxu1 %v980_v58  ;;  %v384_v51 = vsel %vm331_vm1, %v357_v48, 0.0  ;;  %v508_v48 = vld [vmem:[%s1114_s5] sm:$0xff] }
  0xeb   :  { %v385_v52 = vadd.f32 %v384_v51, %v383_v50  ;;  %v510_v50 = vld [vmem:[%s1114_s5 + $0x10] sm:$0xff]  ;;  %v511_v51 = vld [vmem:[%s1114_s5 + $0x18] sm:$0xff] }
  0xec   :  { %474 = vmatpush.msra.mxu1 %v978_v55 }
  0xed   :  { %475 = vmatmul.f32.vlgmr.msra.gmra.mxu1 %v403_v40  ;;  %v509_v40 = vld [vmem:[%s1114_s5 + $0x8] sm:$0xff]  ;;  %s324_s5 = sld [smem:[#allocation2]] }
  0xef   :  { %v252_v53 = vpop.f32.mrf.mxu0  ;;  %602 = vperm.xlu0 %715, %v584_v5  }
  0xf0   :  { %v358_v56 = vmul.f32 %v252_v53, %v252_v53 }
  0xf1   :  { %431 = vperm.xlu2 %717, %v413_v1  }
  0xf2   :  { %v386_v58 = vsel %vm331_vm1, %v358_v56, 0.0 }
  0xf3   :  { %v387_v60 = vadd.f32 %v386_v58, %v385_v52  ;;  %v309_v52 = vpop.f32.mrf.mxu3 }
  0xf4   :  { %v327_v56 = vmul.f32 %v309_v52, %v309_v52 }
  0xf5   :  { %v389_v55 = vadd.f32 %v388_v61, %v387_v60  ;;  %478 = vmatmul.f32.gmra.mxu1 %v404_v59 }
  0xf6   :  { %v332_v58 = vsel %vm331_vm1, %v327_v56, 0.0 }
  0xf7   :  { %v1033_v63 = vadd.f32 %v390_v41, %v389_v55 }
  0xf9   :  { %518 = vperm.xlu2 %717, %v512_v9   ;;  %v392_v4 = vrot.slane %v1033_v63, 4 }
  0xfb   :  { %v312_v53 = vpop.f32.mrf.mxu3  ;;  %v393_v9 = vadd.f32 %v392_v4, %v1033_v63 }
  0xfc   :  { %v328_v57 = vmul.f32 %v312_v53, %v312_v53 }
  0xfd   :  { %481 = vmatmul.f32.gmra.mxu1 %v405_v0 }
  0xfe   :  { %v333_v59 = vsel %vm331_vm1, %v328_v57, 0.0  ;;  %v622_v57 = vstv %s704_s13 }
  0xff   :  { %v334_v55 = vadd.f32 %v333_v59, %v332_v58 }
 0x101   :  { %533 = vperm.xlu2 %717, %v515_v11  }
 0x103   :  { %v315_v54 = vpop.f32.mrf.mxu3 }
 0x104   :  { %v329_v60 = vmul.f32 %v315_v54, %v315_v54 }
 0x105   :  { %484 = vmatmul.f32.gmra.mxu1 %v406_v3 }
 0x106   :  { %v335_v62 = vsel %vm331_vm1, %v329_v60, 0.0 }
 0x107   :  { %v336_v49 = vadd.f32 %v335_v62, %v334_v55 }
 0x109   :  { %597 = vperm.xlu2 %717, %v583_v13  }
 0x10b   :  { %v318_v61 = vpop.f32.mrf.mxu3 }
 0x10c   :  { %v330_v41 = vmul.f32 %v318_v61, %v318_v61  ;;  %v625_v61 = vstv %s703_s14 }
 0x10d   :  { %487 = vmatmul.f32.gmra.mxu1 %v407_v6 }
 0x10e   :  { %v337_v1 = vsel %vm331_vm1, %v330_v41, 0.0 }
 0x10f   :  { %v338_v3 = vadd.f32 %v337_v1, %v336_v49 }
 0x111   :  { %v339_v5 = vrot.slane %v338_v3, 4 }
 0x115   :  { %490 = vmatmul.f32.gmra.mxu1 %v408_v8 }
 0x11b   :  { %v524_v6 = vpop.permute.xlu0 %523 }
 0x11d   :  { %493 = vmatmul.f32.gmra.mxu1 %v409_v10  ;;  %v340_v10 = vadd.f32 %v339_v5, %v338_v3 }
 0x125   :  { %496 = vmatmul.f32.gmra.mxu1 %v410_v12 }
 0x143   :  { %v437_v23 = vpop.permute.xlu2 %436  ;;  %v529_v8 = vpop.permute.xlu1 %528 }
 0x14b   :  { %v432_v33 = vpop.permute.xlu2 %431 }
 0x153   :  { %v519_v2 = vpop.permute.xlu2 %518 }
 0x15b   :  { %v534_v11 = vpop.permute.xlu2 %533 }
 0x16a   :  { %v476_v14 = vpop.f32.mrf.mxu1 }
 0x16b   :  { %v477_v44 = vadd.f32 %v476_v14, %v422_v39  ;;  %v394_v14 = vrot.slane %v393_v9, 2 }
 0x16d   :  { %v500_v47 = vmax.f32 %v477_v44, 0.0 }
 0x172   :  { %v479_v15 = vpop.f32.mrf.mxu1 }
 0x173   :  { %v480_v42 = vadd.f32 %v479_v15, %v427_v36  ;;  %v341_v15 = vrot.slane %v340_v10, 2 }
 0x175   :  { %v501_v46 = vmax.f32 %v480_v42, 0.0 }
 0x17a   :  { %v482_v16 = vpop.f32.mrf.mxu1 }
 0x17b   :  { %v483_v37 = vadd.f32 %v482_v16, %v432_v33 }
 0x17d   :  { %v502_v45 = vmax.f32 %v483_v37, 0.0 }
 0x182   :  { %v485_v17 = vpop.f32.mrf.mxu1 }
 0x183   :  { %v486_v34 = vadd.f32 %v485_v17, %v437_v23  ;;  %v395_v23 = vadd.f32 %v394_v14, %v393_v9 }
 0x185   :  { %v503_v43 = vmax.f32 %v486_v34, 0.0 }
 0x18a   :  { %v488_v18 = vpop.f32.mrf.mxu1 }
 0x18b   :  { %v489_v31 = vadd.f32 %v488_v18, %v442_v25 }
 0x18d   :  { %v504_v38 = vmax.f32 %v489_v31, 0.0 }
 0x192   :  { %v491_v19 = vpop.f32.mrf.mxu1 }
 0x193   :  { %v492_v29 = vadd.f32 %v491_v19, %v447_v21  ;;  %v588_v19 = vpop.permute.xlu0 %587 }
 0x195   :  { %v505_v35 = vmax.f32 %v492_v29, 0.0  ;;  %v396_v29 = vrot.slane %v395_v23, 1 }
 0x197   :  { %v397_v37 = vadd.f32 %v396_v29, %v395_v23 }
 0x19a   :  { %v494_v22 = vpop.f32.mrf.mxu1 }
 0x19b   :  { %v495_v27 = vadd.f32 %v494_v22, %v452_v24  ;;  %v342_v22 = vadd.f32 %v341_v15, %v340_v10  ;;  %v593_v24 = vpop.permute.xlu1 %592 }
 0x19d   :  { %v506_v32 = vmax.f32 %v495_v27, 0.0  ;;  %v343_v63 = vrot.slane %v342_v22, 1 }
 0x19f   :  { %v344_v36 = vadd.f32 %v343_v63, %v342_v22 }
 0x1a2   :  { %v497_v26 = vpop.f32.mrf.mxu1 }
 0x1a3   :  { %v498_v28 = vadd.f32 %v497_v26, %v457_v20  ;;  %v598_v26 = vpop.permute.xlu2 %597 }
 0x1a5   :  { %v507_v30 = vmax.f32 %v498_v28, 0.0 }
 0x1a7   :  { %556 = vmatpush.msrb.mxu2 %v507_v30 }
 0x1a9   :  { %557 = vmatpush.msrb.mxu2 %v506_v32 }
 0x1ab   :  { %558 = vmatpush.msrb.mxu2 %v505_v35 }
 0x1ad   :  { %559 = vmatpush.msrb.mxu2 %v504_v38  ;;  %v603_v38 = vpop.permute.xlu0 %602 }
 0x1af   :  { %560 = vmatpush.msrb.mxu2 %v503_v43 }
 0x1b1   :  { %561 = vmatpush.msrb.mxu2 %v502_v45  ;;  %v398_v45 = vsub.f32 %v344_v36, %v397_v37 }
 0x1b3   :  { %562 = vmatpush.msrb.mxu2 %v501_v46 }
 0x1b5   :  { %563 = vmatpush.msrb.mxu2 %v500_v47  ;;  %v321_v47 = vpop.f32.mrf.mxu3 }
 0x1b6   :  { %705 = vmatmul.msk.f32.vlgmr.msrb.gmra.mxu2 %vm81_vm0, %v508_v48  ;;  %v400_v48 = vstv %s324_s5 }
 0x1be   :  { %706 = vmatmul.msk.f32.gmra.mxu2 %vm81_vm0, %v509_v40 }
 0x1c6   :  { %707 = vmatmul.msk.f32.gmra.mxu2 %vm81_vm0, %v510_v50  ;;  %v399_v50 = vmul.f32 0.5, %v398_v45 }
 0x1ce   :  { %708 = vmatmul.msk.f32.gmra.mxu2 %vm81_vm0, %v511_v51  ;;  %v401_v51 = vadd.f32 %v400_v48, %v321_v47 }
 0x1d0   :  { %v402_v54 = vadd.f32 %v401_v51, %v399_v50 }
 0x1d2   :  { %v623_v59 = vmul.f32 %v622_v57, %v402_v54 }
 0x239   :  { %v565_v0 = vpop.f32.mrf.mxu2 }
 0x23a   :  { %v566_v13 = vadd.f32 %v565_v0, %v519_v2 }
 0x23c   :  { %v577_v20 = vmax.f32 %v566_v13, 0.0 }
 0x23e   :  { %v605_v27 = vmul.f32 %v588_v19, %v577_v20 }
 0x240   :  { %v609_v33 = vsel %vm331_vm1, %v605_v27, 0.0 }
 0x241   :  { %v568_v7 = vpop.f32.mrf.mxu2 }
 0x242   :  { %v569_v12 = vadd.f32 %v568_v7, %v524_v6 }
 0x244   :  { %v578_v17 = vmax.f32 %v569_v12, 0.0 }
 0x246   :  { %v606_v25 = vmul.f32 %v593_v24, %v578_v17 }
 0x248   :  { %v610_v31 = vsel %vm331_vm1, %v606_v25, 0.0 }
 0x249   :  { %v571_v16 = vpop.f32.mrf.mxu2  ;;  %v611_v39 = vadd.f32 %v610_v31, %v609_v33 }
 0x24a   :  { %v572_v18 = vadd.f32 %v571_v16, %v529_v8 }
 0x24c   :  { %v579_v21 = vmax.f32 %v572_v18, 0.0 }
 0x24e   :  { %v607_v28 = vmul.f32 %v598_v26, %v579_v21 }
 0x250   :  { %v612_v34 = vsel %vm331_vm1, %v607_v28, 0.0 }
 0x251   :  { %v574_v30 = vpop.f32.mrf.mxu2  ;;  %v613_v43 = vadd.f32 %v612_v34, %v611_v39 }
 0x252   :  { %v575_v32 = vadd.f32 %v574_v30, %v534_v11 }
 0x254   :  { %v580_v35 = vmax.f32 %v575_v32, 0.0 }
 0x256   :  { %v608_v42 = vmul.f32 %v603_v38, %v580_v35 }
 0x258   :  { %v614_v44 = vsel %vm331_vm1, %v608_v42, 0.0 }
 0x259   :  { %v615_v46 = vadd.f32 %v614_v44, %v613_v43 }
 0x25b   :  { %v616_v40 = vrot.slane %v615_v46, 4 }
 0x25d   :  { %v617_v52 = vadd.f32 %v616_v40, %v615_v46 }
 0x25f   :  { %v618_v53 = vrot.slane %v617_v52, 2 }
 0x261   :  { %v619_v56 = vadd.f32 %v618_v53, %v617_v52 }
 0x263   :  { %v620_v58 = vrot.slane %v619_v56, 1 }
 0x265   :  { %v621_v60 = vadd.f32 %v620_v58, %v619_v56 }
 0x267   :  { %v624_v55 = vadd.f32 %v623_v59, %v621_v60 }
 0x269   :  { %v626_v62 = vadd.f32 %v625_v61, %v624_v55 }
 0x26b   :  { %v709_v41 = vmul.f32 -1.442695, %v626_v62 }
 0x26d   :  { %718 = vpow2.f32 %v709_v41 }
 0x273   :  { %v719_v49 = vpop.eup %718 }
 0x274   :  { %v630_v0 = vadd.f32 1.0, %v719_v49 }
 0x276   :  { %720 = vrcp.f32 %v630_v0  ;;  %v642_v4 = vand.u32 2147483648, %v630_v0  ;;  %v640_v6 = vand.u32 2147483647, %v630_v0  ;;  %vm636_vm3 = vweird.f32 %v630_v0 }
 0x278   :  { %v643_v8 = vor.u32 1.1754944e-38, %v642_v4  ;;  %vm641_vm6 = vcmp.eq.f32.partialorder %v640_v6, 8.507059e+37 }
 0x27c   :  { %v721_v1 = vpop.eup %720 }
 0x27d   :  { %v632_v2 = vmul.f32 %v721_v1, %v630_v0  ;;  %vm637_vm2 = vweird.f32 %v721_v1 }
 0x27e   :  { %vm638_vm4 = vmor %vm636_vm3, %vm637_vm2 }
 0x27f   :  { %v633_v3 = vsub.f32 1.0, %v632_v2 }
 0x281   :  { %v634_v5 = vmul.f32 %v721_v1, %v633_v3 }
 0x283   :  { %v635_v7 = vadd.f32 %v721_v1, %v634_v5 }
 0x285   :  { %v639_v9 = vsel %vm638_vm4, %v721_v1, %v635_v7 }
 0x286   :  { %v644_v10 = vsel %vm641_vm6, %v643_v8, %v639_v9 }
 0x287   :  { %647 = vst.msk [vmem:[#allocation5] sm:$0x1] %vm646_vm5, %v644_v10 }
 0x288   :  { %658 = dma.vmem_to_hbm [thread:$0]  %s654_s1, 16, %s656_s17, [#allocation3]  }
 0x289   :  { %760 = dma.done.wait [#allocation3], 16  }
 0x28a   :  { %761 = vsyncadd [#allocation3], 4294967280 }
 0x28b   :  { %663 = vsyncpa [#allocation3], 1 }
 0x28c   :  { %664 = vsyncpa [#allocation4], 1 }

</bundles_post_ra>
